<compile_context>
chip_gen: v6e
topology: v6e:2x2x1
jax: 0.10.0
libtpu: 0.0.40
codegen_flags: <defaults>
</compile_context>

<pallas_src>
import functools
import math

import jax
import jax.numpy as jnp
from jax.experimental import pallas as pl
from jax.experimental.pallas import tpu as pltpu

LANE = 128
SUBLANE = 8


def _round_up(n, m):
    return ((n + m - 1) // m) * m


def mlp_kernel(x_ref, w1_ref, b1_ref, w2_ref, b2_ref, o_ref):
    x = x_ref[...]                                   # (TB, obs)  f32
    # --- Layer 1 on the VPU: K = obs_size is tiny, MXU would be ~1% utilized.
    h = b1_ref[...]                                  # (1, H) -> broadcasts on first FMA
    for k in range(x.shape[1]):                      # static, tiny (obs_size)
        h = h + x[:, k:k + 1] * w1_ref[k:k + 1, :]
    h = jnp.maximum(h, 0.0)                          # ReLU, (TB, H)
    # --- Layer 2 on the MXU: (TB, H) x (H, Ap=128), f32 accumulation.
    y = jnp.dot(h.astype(w2_ref.dtype), w2_ref[...],
                preferred_element_type=jnp.float32)  # (TB, Ap)
    # Narrow store: only the real action lanes go back to HBM.
    A = o_ref.shape[1]
    o_ref[...] = (y[:, :A] + b2_ref[...]).astype(o_ref.dtype)


@functools.partial(jax.jit, static_argnames=("block_b", "matmul_dtype"))
def net_forward(x, w1, b1, w2, b2, *, block_b=1024, matmul_dtype=jnp.bfloat16):
    """Pallas forward for Net.

    x:  (B, obs_size) f32
    w1: (obs_size, hidden) f32   b1: (1, hidden) f32      (pre-transposed: y = x @ W + b)
    w2: (hidden, n_actions) f32  b2: (1, n_actions) f32
    matmul_dtype: operand dtype for the second (MXU) matmul; f32 accumulation either way.
    """
    B, obs = x.shape
    H = w1.shape[1]
    A = w2.shape[1]

    # Pad only the action dim (MXU N) to a lane multiple; zeros are numerically exact
    # and the padded columns are never stored (narrow output block below).
    Ap = _round_up(max(A, LANE), LANE)
    w2p = jnp.pad(w2, ((0, 0), (0, Ap - A))).astype(matmul_dtype)

    # Batch tiling: TB multiple of 8; keep >= 2 grid steps when the batch allows so a
    # v7x megacore can shard rows across both TensorCores.
    Bs = _round_up(B, SUBLANE)
    TB = min(_round_up(block_b, SUBLANE), Bs)
    if Bs >= 2 * SUBLANE and TB > Bs // 2:
        TB = _round_up(Bs // 2, SUBLANE)
    Bp = _round_up(B, TB)
    xp = x if Bp == B else jnp.pad(x, ((0, Bp - B), (0, 0)))
    grid = (Bp // TB,)

    out = pl.pallas_call(
        mlp_kernel,
        out_shape=jax.ShapeDtypeStruct((Bp, A), jnp.float32),
        grid=grid,
        in_specs=[
            pl.BlockSpec((TB, obs), lambda i: (i, 0)),   # x: tiled over batch
            pl.BlockSpec((obs, H), lambda i: (0, 0)),    # weights: VMEM-resident
            pl.BlockSpec((1, H), lambda i: (0, 0)),
            pl.BlockSpec((H, Ap), lambda i: (0, 0)),
            pl.BlockSpec((1, A), lambda i: (0, 0)),
        ],
        out_specs=pl.BlockSpec((TB, A), lambda i: (i, 0)),  # narrow (B, n_actions) writeback
        compiler_params=pltpu.CompilerParams(
            dimension_semantics=("parallel",)),              # megacore-shard batch on v7x
    )(xp, w1, b1, w2p, b2)

    return out if Bp == B else out[:B]


def init_params(key, obs_size, hidden_size, n_actions):
    """Deterministic init mimicking PyTorch nn.Linear (uniform(+/- 1/sqrt(fan_in)))."""
    k1, k2, k3, k4 = jax.random.split(key, 4)
    bound1 = 1.0 / math.sqrt(obs_size)
    bound2 = 1.0 / math.sqrt(hidden_size)
    # Stored pre-transposed: (in_features, out_features).
    w1 = jax.random.uniform(k1, (obs_size, hidden_size), jnp.float32, -bound1, bound1)
    b1 = jax.random.uniform(k2, (1, hidden_size), jnp.float32, -bound1, bound1)
    w2 = jax.random.uniform(k3, (hidden_size, n_actions), jnp.float32, -bound2, bound2)
    b2 = jax.random.uniform(k4, (1, n_actions), jnp.float32, -bound2, bound2)
    return w1, b1, w2, b2


if __name__ == "__main__":
    # MountainCar-v0: obs_size=2, n_actions=3; small hidden/batch for the test.
    obs_size, hidden_size, n_actions = 2, 32, 3
    batch = 8

    key = jax.random.PRNGKey(0)
    kx, kp = jax.random.split(key)
    x = jax.random.normal(kx, (batch, obs_size), jnp.float32)
    w1, b1, w2, b2 = init_params(kp, obs_size, hidden_size, n_actions)

    ref = jnp.maximum(x @ w1 + b1, 0.0) @ w2 + b2

    # f32 MXU-operand path (exact).
    out = net_forward(x, w1, b1, w2, b2, matmul_dtype=jnp.float32)
    jax.block_until_ready(out)
    assert out.shape == (batch, n_actions)
    assert jnp.allclose(out, ref, atol=1e-5, rtol=1e-5)

    # Default bf16 MXU-operand path (f32 accumulation; looser tolerance) with a batch
    # that is not a multiple of the tile, to exercise the padding/slice paths.
    x5 = x[:5]
    out_bf16 = net_forward(x5, w1, b1, w2, b2)
    jax.block_until_ready(out_bf16)
    assert out_bf16.shape == (5, n_actions)
    assert jnp.allclose(out_bf16, ref[:5], atol=3e-2, rtol=3e-2)

    # Multi-step grid (exercises batch tiling + the >=2-step cap for megacore occupancy).
    xb = jax.random.normal(kx, (48, obs_size), jnp.float32)
    refb = jnp.maximum(xb @ w1 + b1, 0.0) @ w2 + b2
    out_b = net_forward(xb, w1, b1, w2, b2, block_b=16, matmul_dtype=jnp.float32)
    jax.block_until_ready(out_b)
    assert out_b.shape == (48, n_actions)
    assert jnp.allclose(out_b, refb, atol=1e-5, rtol=1e-5)

    print("KERNEL_OK")
</pallas_src>

<mosaic_0001>
module attributes {stable_mosaic.version = 11 : i64} {
  func.func @mlp_kernel(%arg0: i32, %arg1: memref<8x2xf32, #tpu.memory_space<vmem>>, %arg2: memref<2x32xf32, #tpu.memory_space<vmem>>, %arg3: memref<1x32xf32, #tpu.memory_space<vmem>>, %arg4: memref<32x128xf32, #tpu.memory_space<vmem>>, %arg5: memref<1x3xf32, #tpu.memory_space<vmem>>, %arg6: memref<8x3xf32, #tpu.memory_space<vmem>>) attributes {dimension_semantics = [#tpu.dimension_semantics<parallel>], iteration_bounds = array<i64: 1>, scalar_prefetch = 0 : i64, scratch_operands = 0 : i64, tpu.core_type = #tpu.core_type<tc>, window_params = [{transform_indices = @transform_0, window_bounds = array<i64: 8, 2>}, {pipeline_mode = #tpu.pipeline_mode<synchronous>, transform_indices = @transform_1, window_bounds = array<i64: 2, 32>}, {pipeline_mode = #tpu.pipeline_mode<synchronous>, transform_indices = @transform_2, window_bounds = array<i64: 1, 32>}, {pipeline_mode = #tpu.pipeline_mode<synchronous>, transform_indices = @transform_3, window_bounds = array<i64: 32, 128>}, {pipeline_mode = #tpu.pipeline_mode<synchronous>, transform_indices = @transform_4, window_bounds = array<i64: 1, 3>}, {transform_indices = @transform_5, window_bounds = array<i64: 8, 3>}]} {
    %c0 = arith.constant 0 : index
    %c0_0 = arith.constant 0 : index
    %0 = vector.load %arg1[%c0, %c0_0] : memref<8x2xf32, #tpu.memory_space<vmem>>, vector<8x2xf32>
    %c0_1 = arith.constant 0 : index
    %c0_2 = arith.constant 0 : index
    %1 = vector.load %arg3[%c0_1, %c0_2] : memref<1x32xf32, #tpu.memory_space<vmem>>, vector<1x32xf32>
    %2 = vector.extract_strided_slice %0 {offsets = [0, 0], sizes = [8, 1], strides = [1, 1]} : vector<8x2xf32> to vector<8x1xf32>
    %c0_3 = arith.constant 0 : index
    %c0_4 = arith.constant 0 : index
    %3 = vector.load %arg2[%c0_3, %c0_4] : memref<2x32xf32, #tpu.memory_space<vmem>>, vector<1x32xf32>
    %4 = vector.broadcast %2 : vector<8x1xf32> to vector<8x32xf32>
    %5 = vector.broadcast %3 : vector<1x32xf32> to vector<8x32xf32>
    %6 = arith.mulf %4, %5 : vector<8x32xf32>
    %7 = vector.broadcast %1 : vector<1x32xf32> to vector<8x32xf32>
    %8 = arith.addf %7, %6 : vector<8x32xf32>
    %9 = vector.extract_strided_slice %0 {offsets = [0, 1], sizes = [8, 1], strides = [1, 1]} : vector<8x2xf32> to vector<8x1xf32>
    %c1 = arith.constant 1 : index
    %c0_5 = arith.constant 0 : index
    %10 = vector.load %arg2[%c1, %c0_5] : memref<2x32xf32, #tpu.memory_space<vmem>>, vector<1x32xf32>
    %11 = vector.broadcast %9 : vector<8x1xf32> to vector<8x32xf32>
    %12 = vector.broadcast %10 : vector<1x32xf32> to vector<8x32xf32>
    %13 = arith.mulf %11, %12 : vector<8x32xf32>
    %14 = arith.addf %8, %13 : vector<8x32xf32>
    %cst = arith.constant 0.000000e+00 : f32
    %15 = vector.broadcast %cst : f32 to vector<8x32xf32>
    %16 = arith.maximumf %14, %15 : vector<8x32xf32>
    %c0_6 = arith.constant 0 : index
    %c0_7 = arith.constant 0 : index
    %17 = vector.load %arg4[%c0_6, %c0_7] : memref<32x128xf32, #tpu.memory_space<vmem>>, vector<32x128xf32>
    %cst_8 = arith.constant dense<0.000000e+00> : vector<8x128xf32>
    %18 = tpu.matmul %16, %17, %cst_8 {dimension_numbers = #tpu.dot_dimension_numbers<[1], [0], [0], [1], [0, 0, 1, 1], [], []>} : vector<8x32xf32>, vector<32x128xf32>, vector<8x128xf32> -> vector<8x128xf32>
    %19 = vector.extract_strided_slice %18 {offsets = [0, 0], sizes = [8, 3], strides = [1, 1]} : vector<8x128xf32> to vector<8x3xf32>
    %c0_9 = arith.constant 0 : index
    %c0_10 = arith.constant 0 : index
    %20 = vector.load %arg5[%c0_9, %c0_10] : memref<1x3xf32, #tpu.memory_space<vmem>>, vector<1x3xf32>
    %21 = vector.broadcast %20 : vector<1x3xf32> to vector<8x3xf32>
    %22 = arith.addf %19, %21 : vector<8x3xf32>
    %c0_11 = arith.constant 0 : index
    %c0_12 = arith.constant 0 : index
    %23 = vector.load %arg6[%c0_11, %c0_12] : memref<8x3xf32, #tpu.memory_space<vmem>>, vector<8x3xf32>
    tpu.vector_store %arg6[%c0_11, %c0_12], %22 {strides = array<i32>} : memref<8x3xf32, #tpu.memory_space<vmem>>, vector<8x3xf32>,
    return
  }
  func.func @transform_0(%arg0: i32) -> (i32, i32) {
    %c0_i32 = arith.constant 0 : i32
    %c0_i32_0 = arith.constant 0 : i32
    return %arg0, %c0_i32 : i32, i32
  }
  func.func @transform_1(%arg0: i32) -> (i32, i32) {
    %c0_i32 = arith.constant 0 : i32
    %c0_i32_0 = arith.constant 0 : i32
    %c0_i32_1 = arith.constant 0 : i32
    return %c0_i32, %c0_i32_0 : i32, i32
  }
  func.func @transform_2(%arg0: i32) -> (i32, i32) {
    %c0_i32 = arith.constant 0 : i32
    %c0_i32_0 = arith.constant 0 : i32
    %c0_i32_1 = arith.constant 0 : i32
    return %c0_i32, %c0_i32_0 : i32, i32
  }
  func.func @transform_3(%arg0: i32) -> (i32, i32) {
    %c0_i32 = arith.constant 0 : i32
    %c0_i32_0 = arith.constant 0 : i32
    %c0_i32_1 = arith.constant 0 : i32
    return %c0_i32, %c0_i32_0 : i32, i32
  }
  func.func @transform_4(%arg0: i32) -> (i32, i32) {
    %c0_i32 = arith.constant 0 : i32
    %c0_i32_0 = arith.constant 0 : i32
    %c0_i32_1 = arith.constant 0 : i32
    return %c0_i32, %c0_i32_0 : i32, i32
  }
  func.func @transform_5(%arg0: i32) -> (i32, i32) {
    %c0_i32 = arith.constant 0 : i32
    %c0_i32_0 = arith.constant 0 : i32
    return %arg0, %c0_i32 : i32, i32
  }
}

</mosaic_0001>

<bundles_post_ra>
// kernel: net_forward.1
= control target key start
LH: loop header
LB: loop body
LE: loop exit
PB: predicated region body
PF: predicated region fallthrough
CT: control target
= control target key end

     0   :  { %v171_v0 = vmov 0   ;;  %v172_v2 = vmov 0.0   ;;  %v173_v6 = vmov 1   ;;  %vm174_vm0 = vmmov 0   ;;  %s235_s0 = inlined_call_operand.vmem [shape: f32[8,2], index: 0, kind: input, shape index: {}]   ;;  %s236_s3 = inlined_call_operand.vmem [shape: f32[32,128], index: 3, kind: input, shape index: {}]   ;;  %s237_s1 = inlined_call_operand.vmem [shape: f32[2,32], index: 1, kind: input, shape index: {}]   ;;  %s238_s2 = inlined_call_operand.vmem [shape: f32[1,32], index: 2, kind: input, shape index: {}]   ;;  %s239_s4 = inlined_call_operand.vmem [shape: f32[1,3], index: 4, kind: input, shape index: {}]   ;;  %s240_s5 = inlined_call_operand.vmem [shape: f32[8,3], index: 5, kind: output, shape index: {}]  }
   0x1   :  { %169 = vset.pattern.permute.xlu0 %v171_v0  ;;  %v20_v1 = vld [vmem:[%s235_s0] sm:$0xff]  ;;  %154 = vmatprep.subr.mxu0 %v172_v2  ;;  %v55_v3 = vld [vmem:[%s236_s3 + $0x18] sm:$0xff]  ;;  %v54_v4 = vld [vmem:[%s236_s3 + $0x10] sm:$0xff]  ;;  %vm56_vm1 = vcmask 261120   ;;  %vm138_vm2 = vcmask 23552  }
   0x2   :  { %25 = vperm.xlu0 %169, %v20_v1   ;;  %155 = vmatpush3.msra.mxu0 %v55_v3  ;;  %v53_v5 = vld [vmem:[%s236_s3 + $0x8] sm:$0xff]  ;;  %v52_v7 = vld [vmem:[%s236_s3] sm:$0xff] }
   0x3   :  { %156 = vmatprep.subr.mxu0 %v172_v2  ;;  %162 = vmatprep.mubr.msk.f32.mxu0 %vm174_vm0, %v172_v2  ;;  %v144_v8 = vld [vmem:[%s237_s1] ss:$0 sm:$0xff]  ;;  %v146_v12 = vld [vmem:[%s237_s1 + $0x1] ss:$0 sm:$0xff] }
   0x4   :  { %157 = vmatpush3.msra.mxu0 %v54_v4  ;;  %v145_v11 = vld [vmem:[%s238_s2] ss:$0 sm:$0xff] }
   0x5   :  { %158 = vmatprep.subr.mxu0 %v172_v2  ;;  %v148_v18 = vld [vmem:[%s239_s4] ss:$0 sm:$0xff] }
   0x6   :  { %170 = vset.pattern.permute.xlu0 %v173_v6  ;;  %159 = vmatpush3.msra.mxu0 %v53_v5 }
   0x7   :  { %42 = vperm.xlu0 %170, %v20_v1   ;;  %160 = vmatprep.subr.mxu0 %v172_v2 }
   0x8   :  { %161 = vmatpush3.msra.mxu0 %v52_v7 }
  0x7d   :  { %v26_v9 = vpop.permute.xlu0 %25 }
  0x7e   :  { %v32_v10 = vmul.f32 %v144_v8, %v26_v9 }
  0x80   :  { %v39_v14 = vadd.f32 %v145_v11, %v32_v10 }
  0x82   :  { %v43_v13 = vpop.permute.xlu0 %42 }
  0x83   :  { %v49_v15 = vmul.f32 %v146_v12, %v43_v13 }
  0x85   :  { %v50_v16 = vadd.f32 %v49_v15, %v39_v14 }
  0x87   :  { %v51_v17 = vmax.f32 %v50_v16, 0.0 }
  0x89   :  { %163 = vmatmul.mubr.msk.f32.vlgmr.msra.gmra.mxu0 %vm56_vm1, %v51_v17 }
 0x149   :  { %v126_v19 = vpop.f32.mrf.mxu0 }
 0x14a   :  { %v137_v20 = vadd.f32 %v148_v18, %v126_v19 }
 0x14b   :  { %v164_v21 = vpop.f32.mrf.mxu0 }
 0x14c   :  { %139 = vst.msk [vmem:[%s240_s5] sm:$0xff] %vm138_vm2, %v137_v20 }

</bundles_post_ra>
